<compile_context>
chip_gen: v7x
topology: tpu7x:2x2x1
jax: 0.10.0
libtpu: 0.0.40
codegen_flags: <defaults>
</compile_context>

<pallas_src>
import functools

import jax
import jax.numpy as jnp
from jax.experimental import pallas as pl
from jax.experimental.pallas import tpu as pltpu


def _round_up(v, m):
    return ((v + m - 1) // m) * m


def _round_down(v, m):
    return (v // m) * m


def _skip_kernel(x_ref, w_ref, b_ref, out_ref, lat_ref, *, skip, rows, use_mxu):
    # x_ref : (R, hw_tile)   w_ref : (R, R) block-diag weight   b_ref : (R, 1)
    x = x_ref[...].astype(jnp.float32)
    w = w_ref[...].astype(jnp.float32)
    b = b_ref[...].astype(jnp.float32)
    if use_mxu:
        # Large channel count: use the MXU.
        latent = jnp.dot(w, x, preferred_element_type=jnp.float32) + b
    else:
        # Tiny channel count: a 128^2/256^2 MXU would be <1% utilized, so do
        # the 1x1 conv as `rows` unrolled VPU FMAs (kernel is HBM-bound; this
        # frees the MXU push/pop path entirely).
        latent = jnp.broadcast_to(b, x.shape)
        for c in range(rows):
            latent = latent + w[:, c:c + 1] * x[c:c + 1, :]
    lat_ref[...] = latent.astype(lat_ref.dtype)
    out_ref[...] = (skip * x + latent).astype(out_ref.dtype)


def skip_module_forward(x_nchw, w_conv, b_conv, skip, *, out_dtype=None,
                        vmem_budget_bytes=20 << 20, per_stream_bytes=2 << 20):
    """Pallas implementation of SkipModule.forward with a 1x1-conv submodule.

    x_nchw : (N, C, H, W) float32
    w_conv : (C, C, 1, 1) float32 (PyTorch Conv2d weight layout)
    b_conv : (C,) float32
    skip   : python float (opt.skip)
    returns (skip * x + latent, latent), both NCHW, dtype out_dtype (default
    input dtype; pass jnp.bfloat16 on v6e/v7x to halve write traffic).
    """
    N, C, H, W = x_nchw.shape
    assert w_conv.shape[0] == C, "skip connection requires C_out == C_in"
    HW = H * W
    out_dtype = x_nchw.dtype if out_dtype is None else jnp.dtype(out_dtype)

    # --- Sublane packing: fill the 8 sublanes when C < 8 (free reshape). ---
    if C < 8 and 8 % C == 0 and N % (8 // C) == 0:
        B_t = 8 // C
    else:
        B_t = 1
    NG, R = N // B_t, B_t * C

    x3 = x_nchw.reshape(NG, R, HW)                 # contiguous -> free reshape
    w_mat = w_conv[:, :, 0, 0]                     # (C, C)
    w_bd = w_mat if B_t == 1 else jnp.kron(jnp.eye(B_t, dtype=w_mat.dtype), w_mat)
    b_col = jnp.tile(b_conv, B_t).reshape(R, 1)    # (R, 1), broadcasts on lanes

    # --- Block size: biggest lane-dense tile whose TOTAL double-buffered
    #     footprint (x + out + lat, rows padded to 8 sublanes) fits the budget.
    in_item = jnp.dtype(x3.dtype).itemsize
    out_item = jnp.dtype(out_dtype).itemsize
    R_pad = _round_up(R, 8)
    bytes_per_lane = 2 * R_pad * (in_item + 2 * out_item)   # 2 buffers/stream
    hw_pad = _round_up(HW, 128)
    block_hw = min(
        hw_pad,
        _round_down(vmem_budget_bytes // bytes_per_lane, 128),
        _round_down(per_stream_bytes // (R_pad * in_item), 128),
    )
    block_hw = max(block_hw, 128)
    if NG == 1 and HW >= 256:
        # Single batch group: keep >= 2 HW tiles so both v7x TensorCores work.
        block_hw = min(block_hw, max(128, _round_up(pl.cdiv(HW, 2), 128)))
    grid = (NG, pl.cdiv(HW, block_hw))

    kernel = functools.partial(_skip_kernel, skip=float(skip), rows=R,
                               use_mxu=R > 32)

    cost = pl.CostEstimate(
        flops=2 * N * C * C * HW + 3 * N * C * HW,
        transcendentals=0,
        bytes_accessed=(x3.size * in_item + 2 * x3.size * out_item
                        + w_bd.size * in_item + b_col.size * in_item),
    )

    out3, lat3 = pl.pallas_call(
        kernel,
        out_shape=(
            jax.ShapeDtypeStruct((NG, R, HW), out_dtype),
            jax.ShapeDtypeStruct((NG, R, HW), out_dtype),
        ),
        grid_spec=pl.GridSpec(
            grid=grid,
            in_specs=[
                # batch-group dim squeezed out; kernel sees (R, block_hw)
                pl.BlockSpec((None, R, block_hw), lambda g, j: (g, 0, j)),
                pl.BlockSpec((R, R), lambda g, j: (0, 0)),   # weight, resident
                pl.BlockSpec((R, 1), lambda g, j: (0, 0)),   # bias, resident
            ],
            out_specs=[
                pl.BlockSpec((None, R, block_hw), lambda g, j: (g, 0, j)),
                pl.BlockSpec((None, R, block_hw), lambda g, j: (g, 0, j)),
            ],
        ),
        compiler_params=pltpu.CompilerParams(
            dimension_semantics=("parallel", "parallel"),
            # 32 MiB is v7x-safe (64 MiB physical); the 20 MiB block budget
            # above keeps us well inside it.  Can be raised on v5e/v6e.
            vmem_limit_bytes=32 << 20,
        ),
        cost_estimate=cost,
    )(x3, w_bd, b_col)

    return out3.reshape(N, C, H, W), lat3.reshape(N, C, H, W)


if __name__ == "__main__":
    key = jax.random.PRNGKey(0)
    kx, kw, kb = jax.random.split(key, 3)
    skip = 0.5  # opt.skip

    def reference(x, w_conv, b_conv):
        lat = (jnp.einsum("oc,nchw->nohw", w_conv[:, :, 0, 0], x)
               + b_conv[None, :, None, None])
        return skip * x + lat, lat

    C = 4
    w_conv = jax.random.normal(kw, (C, C, 1, 1), dtype=jnp.float32) * 0.1
    b_conv = jax.random.normal(kb, (C,), dtype=jnp.float32) * 0.1

    # Case 1: demo shape (N=2, C=4, 16x16) -> batch packing (Bt=2), 2 HW tiles.
    x = jax.random.normal(kx, (2, C, 16, 16), dtype=jnp.float32)
    out, lat = skip_module_forward(x, w_conv, b_conv, skip)
    out, lat = jax.block_until_ready(out), jax.block_until_ready(lat)
    out_ref, lat_ref = reference(x, w_conv, b_conv)
    assert jnp.allclose(lat, lat_ref, atol=1e-5), "latent mismatch"
    assert jnp.allclose(out, out_ref, atol=1e-5), "skip output mismatch"

    # Case 2: HW=144 (not a multiple of 128) -> masked partial tile path.
    x2 = jax.random.normal(kx, (2, C, 12, 12), dtype=jnp.float32)
    out2, lat2 = skip_module_forward(x2, w_conv, b_conv, skip)
    out2, lat2 = jax.block_until_ready(out2), jax.block_until_ready(lat2)
    out2_ref, lat2_ref = reference(x2, w_conv, b_conv)
    assert jnp.allclose(lat2, lat2_ref, atol=1e-5), "latent mismatch (partial)"
    assert jnp.allclose(out2, out2_ref, atol=1e-5), "skip mismatch (partial)"

    # Case 3: N=3 (packing falls back to Bt=1, sublane-padded path).
    xb = jax.random.normal(kb, (3, C, 16, 16), dtype=jnp.float32)
    outb, latb = skip_module_forward(xb, w_conv, b_conv, skip)
    outb, latb = jax.block_until_ready(outb), jax.block_until_ready(latb)
    outb_ref, latb_ref = reference(xb, w_conv, b_conv)
    assert jnp.allclose(latb, latb_ref, atol=1e-5), "latent mismatch (Bt=1)"
    assert jnp.allclose(outb, outb_ref, atol=1e-5), "skip mismatch (Bt=1)"

    # Case 4: bf16 outputs (write-traffic saver for v6e/v7x).  Internal math is
    # still f32, so it must match the f32 result cast to bf16 exactly.
    out_bf, lat_bf = skip_module_forward(x, w_conv, b_conv, skip,
                                         out_dtype=jnp.bfloat16)
    out_bf, lat_bf = jax.block_until_ready(out_bf), jax.block_until_ready(lat_bf)
    assert jnp.array_equal(out_bf, out.astype(jnp.bfloat16)), "bf16 out mismatch"
    assert jnp.array_equal(lat_bf, lat.astype(jnp.bfloat16)), "bf16 lat mismatch"

    print("KERNEL_OK")
</pallas_src>

<mosaic_0001>
module attributes {stable_mosaic.version = 11 : i64} {
  func.func @_skip_kernel(%arg0: i32, %arg1: i32, %arg2: memref<1x8x128xf32, #tpu.memory_space<vmem>>, %arg3: memref<8x8xf32, #tpu.memory_space<vmem>>, %arg4: memref<8x1xf32, #tpu.memory_space<vmem>>, %arg5: memref<1x8x128xf32, #tpu.memory_space<vmem>>, %arg6: memref<1x8x128xf32, #tpu.memory_space<vmem>>) attributes {dimension_semantics = [#tpu.dimension_semantics<parallel>, #tpu.dimension_semantics<parallel>], iteration_bounds = array<i64: 1, 2>, scalar_prefetch = 0 : i64, scratch_operands = 0 : i64, tpu.core_type = #tpu.core_type<tc>, window_params = [{transform_indices = @transform_0, window_bounds = array<i64: 1, 8, 128>}, {pipeline_mode = #tpu.pipeline_mode<synchronous>, transform_indices = @transform_1, window_bounds = array<i64: 8, 8>}, {pipeline_mode = #tpu.pipeline_mode<synchronous>, transform_indices = @transform_2, window_bounds = array<i64: 8, 1>}, {transform_indices = @transform_3, window_bounds = array<i64: 1, 8, 128>}, {transform_indices = @transform_4, window_bounds = array<i64: 1, 8, 128>}]} {
    %c0 = arith.constant 0 : index
    %c0_0 = arith.constant 0 : index
    %c0_1 = arith.constant 0 : index
    %0 = vector.load %arg2[%c0, %c0_0, %c0_1] : memref<1x8x128xf32, #tpu.memory_space<vmem>>, vector<1x8x128xf32>
    %1 = vector.shape_cast %0 : vector<1x8x128xf32> to vector<8x128xf32>
    %c0_2 = arith.constant 0 : index
    %c0_3 = arith.constant 0 : index
    %2 = vector.load %arg3[%c0_2, %c0_3] : memref<8x8xf32, #tpu.memory_space<vmem>>, vector<8x8xf32>
    %c0_4 = arith.constant 0 : index
    %c0_5 = arith.constant 0 : index
    %3 = vector.load %arg4[%c0_4, %c0_5] : memref<8x1xf32, #tpu.memory_space<vmem>>, vector<8x1xf32>
    %4 = vector.shape_cast %3 : vector<8x1xf32> to vector<8x1xf32>
    %5 = vector.broadcast %4 : vector<8x1xf32> to vector<8x128xf32>
    %6 = vector.extract_strided_slice %2 {offsets = [0, 0], sizes = [8, 1], strides = [1, 1]} : vector<8x8xf32> to vector<8x1xf32>
    %7 = vector.extract_strided_slice %1 {offsets = [0, 0], sizes = [1, 128], strides = [1, 1]} : vector<8x128xf32> to vector<1x128xf32>
    %8 = vector.broadcast %6 : vector<8x1xf32> to vector<8x128xf32>
    %9 = vector.broadcast %7 : vector<1x128xf32> to vector<8x128xf32>
    %10 = arith.mulf %8, %9 : vector<8x128xf32>
    %11 = arith.addf %5, %10 : vector<8x128xf32>
    %12 = vector.extract_strided_slice %2 {offsets = [0, 1], sizes = [8, 1], strides = [1, 1]} : vector<8x8xf32> to vector<8x1xf32>
    %13 = vector.extract_strided_slice %1 {offsets = [1, 0], sizes = [1, 128], strides = [1, 1]} : vector<8x128xf32> to vector<1x128xf32>
    %14 = vector.broadcast %12 : vector<8x1xf32> to vector<8x128xf32>
    %15 = vector.broadcast %13 : vector<1x128xf32> to vector<8x128xf32>
    %16 = arith.mulf %14, %15 : vector<8x128xf32>
    %17 = arith.addf %11, %16 : vector<8x128xf32>
    %18 = vector.extract_strided_slice %2 {offsets = [0, 2], sizes = [8, 1], strides = [1, 1]} : vector<8x8xf32> to vector<8x1xf32>
    %19 = vector.extract_strided_slice %1 {offsets = [2, 0], sizes = [1, 128], strides = [1, 1]} : vector<8x128xf32> to vector<1x128xf32>
    %20 = vector.broadcast %18 : vector<8x1xf32> to vector<8x128xf32>
    %21 = vector.broadcast %19 : vector<1x128xf32> to vector<8x128xf32>
    %22 = arith.mulf %20, %21 : vector<8x128xf32>
    %23 = arith.addf %17, %22 : vector<8x128xf32>
    %24 = vector.extract_strided_slice %2 {offsets = [0, 3], sizes = [8, 1], strides = [1, 1]} : vector<8x8xf32> to vector<8x1xf32>
    %25 = vector.extract_strided_slice %1 {offsets = [3, 0], sizes = [1, 128], strides = [1, 1]} : vector<8x128xf32> to vector<1x128xf32>
    %26 = vector.broadcast %24 : vector<8x1xf32> to vector<8x128xf32>
    %27 = vector.broadcast %25 : vector<1x128xf32> to vector<8x128xf32>
    %28 = arith.mulf %26, %27 : vector<8x128xf32>
    %29 = arith.addf %23, %28 : vector<8x128xf32>
    %30 = vector.extract_strided_slice %2 {offsets = [0, 4], sizes = [8, 1], strides = [1, 1]} : vector<8x8xf32> to vector<8x1xf32>
    %31 = vector.extract_strided_slice %1 {offsets = [4, 0], sizes = [1, 128], strides = [1, 1]} : vector<8x128xf32> to vector<1x128xf32>
    %32 = vector.broadcast %30 : vector<8x1xf32> to vector<8x128xf32>
    %33 = vector.broadcast %31 : vector<1x128xf32> to vector<8x128xf32>
    %34 = arith.mulf %32, %33 : vector<8x128xf32>
    %35 = arith.addf %29, %34 : vector<8x128xf32>
    %36 = vector.extract_strided_slice %2 {offsets = [0, 5], sizes = [8, 1], strides = [1, 1]} : vector<8x8xf32> to vector<8x1xf32>
    %37 = vector.extract_strided_slice %1 {offsets = [5, 0], sizes = [1, 128], strides = [1, 1]} : vector<8x128xf32> to vector<1x128xf32>
    %38 = vector.broadcast %36 : vector<8x1xf32> to vector<8x128xf32>
    %39 = vector.broadcast %37 : vector<1x128xf32> to vector<8x128xf32>
    %40 = arith.mulf %38, %39 : vector<8x128xf32>
    %41 = arith.addf %35, %40 : vector<8x128xf32>
    %42 = vector.extract_strided_slice %2 {offsets = [0, 6], sizes = [8, 1], strides = [1, 1]} : vector<8x8xf32> to vector<8x1xf32>
    %43 = vector.extract_strided_slice %1 {offsets = [6, 0], sizes = [1, 128], strides = [1, 1]} : vector<8x128xf32> to vector<1x128xf32>
    %44 = vector.broadcast %42 : vector<8x1xf32> to vector<8x128xf32>
    %45 = vector.broadcast %43 : vector<1x128xf32> to vector<8x128xf32>
    %46 = arith.mulf %44, %45 : vector<8x128xf32>
    %47 = arith.addf %41, %46 : vector<8x128xf32>
    %48 = vector.extract_strided_slice %2 {offsets = [0, 7], sizes = [8, 1], strides = [1, 1]} : vector<8x8xf32> to vector<8x1xf32>
    %49 = vector.extract_strided_slice %1 {offsets = [7, 0], sizes = [1, 128], strides = [1, 1]} : vector<8x128xf32> to vector<1x128xf32>
    %50 = vector.broadcast %48 : vector<8x1xf32> to vector<8x128xf32>
    %51 = vector.broadcast %49 : vector<1x128xf32> to vector<8x128xf32>
    %52 = arith.mulf %50, %51 : vector<8x128xf32>
    %53 = arith.addf %47, %52 : vector<8x128xf32>
    %c0_6 = arith.constant 0 : index
    %c0_7 = arith.constant 0 : index
    %c0_8 = arith.constant 0 : index
    %54 = vector.load %arg6[%c0_6, %c0_7, %c0_8] : memref<1x8x128xf32, #tpu.memory_space<vmem>>, vector<1x8x128xf32>
    %55 = vector.shape_cast %54 : vector<1x8x128xf32> to vector<8x128xf32>
    %56 = vector.shape_cast %53 : vector<8x128xf32> to vector<1x8x128xf32>
    tpu.vector_store %arg6[%c0_6, %c0_7, %c0_8], %56 {strides = array<i32>} : memref<1x8x128xf32, #tpu.memory_space<vmem>>, vector<1x8x128xf32>,
    %cst = arith.constant 5.000000e-01 : f32
    %57 = vector.broadcast %cst : f32 to vector<8x128xf32>
    %58 = arith.mulf %57, %1 : vector<8x128xf32>
    %59 = arith.addf %58, %53 : vector<8x128xf32>
    %c0_9 = arith.constant 0 : index
    %c0_10 = arith.constant 0 : index
    %c0_11 = arith.constant 0 : index
    %60 = vector.load %arg5[%c0_9, %c0_10, %c0_11] : memref<1x8x128xf32, #tpu.memory_space<vmem>>, vector<1x8x128xf32>
    %61 = vector.shape_cast %60 : vector<1x8x128xf32> to vector<8x128xf32>
    %62 = vector.shape_cast %59 : vector<8x128xf32> to vector<1x8x128xf32>
    tpu.vector_store %arg5[%c0_9, %c0_10, %c0_11], %62 {strides = array<i32>} : memref<1x8x128xf32, #tpu.memory_space<vmem>>, vector<1x8x128xf32>,
    return
  }
  func.func @transform_0(%arg0: i32, %arg1: i32) -> (i32, i32, i32) {
    %c0_i32 = arith.constant 0 : i32
    %c0_i32_0 = arith.constant 0 : i32
    return %arg0, %c0_i32, %arg1 : i32, i32, i32
  }
  func.func @transform_1(%arg0: i32, %arg1: i32) -> (i32, i32) {
    %c0_i32 = arith.constant 0 : i32
    %c0_i32_0 = arith.constant 0 : i32
    %c0_i32_1 = arith.constant 0 : i32
    return %c0_i32, %c0_i32_0 : i32, i32
  }
  func.func @transform_2(%arg0: i32, %arg1: i32) -> (i32, i32) {
    %c0_i32 = arith.constant 0 : i32
    %c0_i32_0 = arith.constant 0 : i32
    %c0_i32_1 = arith.constant 0 : i32
    return %c0_i32, %c0_i32_0 : i32, i32
  }
  func.func @transform_3(%arg0: i32, %arg1: i32) -> (i32, i32, i32) {
    %c0_i32 = arith.constant 0 : i32
    %c0_i32_0 = arith.constant 0 : i32
    return %arg0, %c0_i32, %arg1 : i32, i32, i32
  }
  func.func @transform_4(%arg0: i32, %arg1: i32) -> (i32, i32, i32) {
    %c0_i32 = arith.constant 0 : i32
    %c0_i32_0 = arith.constant 0 : i32
    return %arg0, %c0_i32, %arg1 : i32, i32, i32
  }
}

</mosaic_0001>

<bundles_post_ra>
// kernel: tpu_custom_call.1
= control target key start
LH: loop header
LB: loop body
LE: loop exit
PB: predicated region body
PF: predicated region fallthrough
CT: control target
= control target key end

     0   :  { %10 = vsyncpa [#allocation3], 0  ;;  %s989_s0 = inlined_call_operand.hbm [shape: f32[1,8,256], index: 0, kind: input, shape index: {}]   ;;  %s990_s1 = inlined_call_operand.vmem [shape: f32[8,8], index: 1, kind: input, shape index: {}]   ;;  %s991_s2 = inlined_call_operand.vmem [shape: f32[8,1], index: 2, kind: input, shape index: {}]   ;;  %s992_s3 = inlined_call_operand.hbm [shape: f32[1,8,256], index: 3, kind: output, shape index: {0}]   ;;  %s993_s4 = inlined_call_operand.hbm [shape: f32[1,8,256], index: 4, kind: output, shape index: {1}]  }
   0x1   :  { %12 = vsyncpa [#allocation3 + $0x1], 0 }
   0x2   :  { %13 = vsyncpa [#allocation4], 0 }
   0x3   :  { %15 = vsyncpa [#allocation4 + $0x1], 0 }
   0x4   :  { %16 = vsyncpa [#allocation7], 0 }
   0x5   :  { %18 = vsyncpa [#allocation7 + $0x1], 0  ;;  %s771_s15 = smov 0   ;;  %s773_s16 = smov 0  }
   0x6   :  { %s775_s17 = smov 0   ;;  %s777_s18 = smov 0  }
   0x7   :  { %s779_s19 = smov 0   ;;  %s781_s20 = smov 0  }
   0x8 LB: > { %s489_s21 = sadd.s32 4294967295, %s733_s20   ;;  %s490_s22 = sadd.s32 4294967294, %s733_s20   ;;  %s733_s20 = sphi %s781_s20, %s24_s20   ;;  %s729_s19 = sphi %s779_s19, %s1009_s19   ;;  %s725_s18 = sphi %s777_s18, %s1008_s18   ;;  %s721_s17 = sphi %s775_s17, %s1007_s17   ;;  %s717_s16 = sphi %s773_s16, %s1006_s16   ;;  %s713_s15 = sphi %s771_s15, %s1005_s15  }
   0x9   : > { %s33_s23 = sadd.s32 1, %s729_s19  ;;  %s45_s24 = sadd.s32 1, %s721_s17 }
   0xa   : > { %p34_p0 = scmp.ge.s32.totalorder %s33_s23, 2  ;;  %p52_p1 = scmp.ne.s32.totalorder %s721_s17, %s717_s16 }
   0xb   : > { %p53_p2 = scmp.eq.s32.totalorder %s733_s20, 0  ;;  %p58_p3 = scmp.ne.s32.totalorder %s717_s16, %s713_s15 }
   0xc   : > { %s1011_s23 = smov (%p34_p0, %s33_s23), 0  ;;  %p59_p5 = scmp.eq.s32.totalorder %s489_s21, 0 }
   0xd   : > { %p812_p4 = por %p53_p2, %p52_p1  ;;  %s41_s26 = ssub.s32 %s729_s19, %s1011_s23 }
   0xe   : > { %p126_p6 = scmp.eq.s32.totalorder %s489_s21, 1  ;;  %p43_p7 = scmp.eq.s32.totalorder %s41_s26, 0 }
   0xf   : > { %p818_p8 = por %p59_p5, %p58_p3  ;;  %p132_p10 = scmp.eq.s32.totalorder %s490_s22, 1 }
  0x10   : > { %p822_p9 = por %p126_p6, %p52_p1  ;;  %p522_p13 = scmp.lt.s32.totalorder %s733_s20, 2 }
  0x11   : > { %s827_s29 = scalar_select %p43_p7, %s721_s17, %s45_s24  }
  0x12   : > { %s997_s28 = scalar_select %p822_p9, 1, 0 }
  0x13   : > { %p829_p11 = por %p132_p10, %p58_p3  ;;  %s186_s5 = sand.u32 1, %s721_s17  }
  0x14   : > { %s493_s6 = sshll.u32 %s186_s5, 3  ;;  %s494_s7 = sshll.u32 %s729_s19, 7 }
  0x15   : > { %s998_s30 = scalar_select %p829_p11, 1, 0 }
  0x16   : > { %s840_s10 = scalar_lea.hbm %s989_s0, %s494_s7  ;;  %s190_s11 = scalar_lea.vmem [#allocation2], %s493_s6 }
  0x17   : > { %s199_s12 = sshll.u32 %s190_s11, 4  ;;  %p846_p0 = pnand %p522_p13, %p812_p4  ;;  %s842_s12 = int_to_ptr.vmem [resolvable:$true] %s199_s12 }
  0x18   : > { %s187_s14 = scalar_lea.sflag [#allocation3], %s186_s5  ;;  %s589_s21 = scalar_lea.hbm %s840_s10, 128 }
  0x19   : > { %p590_p3 = scmp.ne.s32.totalorder %s840_s10, %s589_s21  ;;  %p591_p5 = pneg %p846_p0 }
  0x1a   : > { %s594_s25 = scalar_lea.hbm %s989_s0, 256  ;;  %p595_p4 = scmp.lt.u32.totalorder %s840_s10, %s989_s0 }
  0x1b   : > { %p592_p6 = pnand %p591_p5, %p590_p3  ;;  %p596_p10 = scmp.lt.u32.totalorder %s594_s25, %s589_s21 }
  0x1c   : > { %p598_p12 = scmp.lt.u32.totalorder %s589_s21, %s840_s10 }
  0x1d   : > { %p593_p7 = pneg %p592_p6  ;;  %p597_p13 = por %p596_p10, %p595_p4 }
  0x1f   : > { %p599_p1 = por %p598_p12, %p597_p13 }
  0x21   : > { %p600_p2 = pnand %p599_p1, %p593_p7 }
  0x23   : > { %603 = shalt.err (!%p600_p2)
}
  0x24   : > { %s604_s5 = scalar_lea.vmem %s842_s12, 128  ;;  %s735_s7 = smov [#allocation2]  }
  0x25   : > { %p605_p3 = scmp.ne.s32.totalorder %s842_s12, %s604_s5  ;;  %s609_s8 = sshll.u32 %s735_s7, 4  ;;  %s610_s8 = int_to_ptr.vmem [resolvable:$false] %s609_s8 }
  0x26   : > { %s611_s9 = scalar_lea.vmem %s610_s8, 256  ;;  %p612_p9 = scmp.lt.s32.totalorder %s842_s12, %s610_s8 }
  0x27   : > { %p607_p6 = pnand %p605_p3, %p591_p5  ;;  %p613_p4 = scmp.lt.s32.totalorder %s611_s9, %s604_s5 }
  0x29   : > { %p608_p11 = pneg %p607_p6  ;;  %p614_p10 = por %p613_p4, %p612_p9 }
  0x2b   : > { %p615_p12 = pnand %p614_p10, %p608_p11 }
  0x2d   : > { %618 = shalt.err (!%p615_p12)
}
  0x2e   : > { %514 = dma.hbm_to_vmem [thread:$0]  (!%p846_p0), %s840_s10, 128, %s842_s12, %s187_s14  }
  0x2f   : > { %p1000_p1 = scmp.lt.s32.totalorder %s733_s20, 3  ;;  %p1001_p2 = scmp.ge.s32.totalorder %s733_s20, 1 }
  0x31   : > { %p205_p5 = pnand %p1001_p2, %p1000_p1 }
  0x32   : > { %s882_s11 = sand.u32 (!%p205_p5), 1, %s717_s16  }
  0x33   : > { %208 = sbr.rel (%p205_p5) target bundleno = 250 (0xfa), region = 32  ;;  %s885_s21 = sshll.u32 (!%p205_p5), %s882_s11, 3 }
  0x34   : > { %s211_s22 = scalar_lea.sflag (!%p205_p5), [#allocation3], %s882_s11  ;;  %s214_s13 = scalar_lea.vmem (!%p205_p5), [#allocation2], %s885_s21 }
  0x3a   : > { %700 = dma.done.wait (%p818_p8), %s211_s22, 128  }
  0x3b   : > { %702 = vsyncadd (%p818_p8), %s211_s22, 4294967168  ;;  %v736_v0 = vmov 1   ;;  %v737_v1 = vmov 0   ;;  %v245_v2 = vld [vmem:[%s990_s1] sm:$0xff]  ;;  %v738_v4 = vmov 2   ;;  %v739_v5 = vmov 3  }
  0x3c   : > { %581 = vset.pattern.permute.xlu1 %v736_v0  ;;  %580 = vset.pattern.permute.xlu0 %v737_v1  ;;  %v246_v3 = vld [vmem:[%s991_s2] sm:$0xff]  ;;  %v740_v6 = vmov 4   ;;  %v741_v7 = vmov 6   ;;  %v742_v8 = vmov 5   ;;  %v743_v9 = vmov 7   ;;  %s501_s27 = sshll.u32 %s725_s18, 7 }
  0x3d   : > { %264 = vperm.xlu1 %581, %v245_v2   ;;  %254 = vperm.xlu0 %580, %v245_v2   ;;  %v257_v10 = vlaneseq  ;;  %v244_v13 = vld [vmem:[%s214_s13] sm:$0xff]  ;;  %s243_s25 = scalar_lea.vmem [#allocation6], %s885_s21  ;;  %s236_s6 = scalar_lea.vmem [#allocation5], %s885_s21 }
  0x3e   : > { %s373_s26 = sshll.u32 %s243_s25, 4  ;;  %v334_v53 = vmul.f32 0.5, %v244_v13  ;;  %s358_s5 = sshll.u32 %s236_s6, 4  ;;  %s911_s26 = int_to_ptr.vmem [resolvable:$true] %s373_s26  ;;  %s918_s5 = int_to_ptr.vmem [resolvable:$true] %s358_s5 }
  0x3f   : > { %v258_v11 = vshrl.u32 %v257_v10, 7  ;;  %s909_s9 = scalar_lea.hbm %s993_s4, %s501_s27  ;;  %s916_s13 = scalar_lea.hbm %s992_s3, %s501_s27 }
  0x40   : > { %s343_s10 = scalar_lea.sflag [#allocation7], %s882_s11  ;;  %s619_s12 = scalar_lea.vmem %s911_s26, 128 }
  0x41   : > { %582 = vset.pattern.permute.xlu1 %v738_v4  ;;  %249 = vperm.xlu0 %580, %v246_v3   ;;  %v259_v12 = vsub.s32 0, %v258_v11  ;;  %v269_v14 = vsub.s32 1, %v258_v11  ;;  %v279_v16 = vsub.s32 2, %v258_v11  ;;  %v289_v22 = vsub.s32 3, %v258_v11  ;;  %p620_p8 = scmp.ne.s32.totalorder %s911_s26, %s619_s12  ;;  %p1002_p9 = scmp.ne.s32.totalorder %s997_s28, 0 }
  0x42   : > { %274 = vperm.xlu1 %582, %v245_v2   ;;  %v299_v24 = vsub.s32 4, %v258_v11  ;;  %v309_v32 = vsub.s32 5, %v258_v11  ;;  %v319_v33 = vsub.s32 6, %v258_v11  ;;  %v329_v42 = vsub.s32 7, %v258_v11  ;;  %s744_s14 = smov [#allocation6]  }
  0x43   : > { %v260_v15 = vrot.slane %v244_v13, %v259_v12  ;;  %v270_v19 = vrot.slane %v244_v13, %v269_v14  ;;  %v280_v21 = vrot.slane %v244_v13, %v279_v16  ;;  %v290_v29 = vrot.slane %v244_v13, %v289_v22  ;;  %p621_p11 = pnand %p620_p8, %p1002_p9  ;;  %s623_s24 = sshll.u32 %s744_s14, 4  ;;  %s624_s24 = int_to_ptr.vmem [resolvable:$false] %s623_s24 }
  0x44   : > { %v300_v31 = vrot.slane %v244_v13, %v299_v24  ;;  %v310_v40 = vrot.slane %v244_v13, %v309_v32  ;;  %v320_v41 = vrot.slane %v244_v13, %v319_v33  ;;  %v330_v48 = vrot.slane %v244_v13, %v329_v42  ;;  %s625_s7 = scalar_lea.vmem %s624_s24, 256  ;;  %p626_p7 = scmp.lt.s32.totalorder %s911_s26, %s624_s24 }
  0x45   : > { %583 = vset.pattern.permute.xlu0 %v739_v5  ;;  %p622_p0 = pneg %p621_p11  ;;  %p627_p13 = scmp.lt.s32.totalorder %s625_s7, %s619_s12 }
  0x46   : > { %584 = vset.pattern.permute.xlu1 %v740_v6  ;;  %284 = vperm.xlu0 %583, %v245_v2  }
  0x47   : > { %294 = vperm.xlu1 %584, %v245_v2   ;;  %p628_p3 = por %p627_p13, %p626_p7 }
  0x49   : > { %p629_p6 = pnand %p628_p3, %p622_p0 }
  0x4a   : > { %586 = vset.pattern.permute.xlu0 %v741_v7 }
  0x4b   : > { %585 = vset.pattern.permute.xlu1 %v742_v8  ;;  %314 = vperm.xlu0 %586, %v245_v2  }
  0x4c   : > { %304 = vperm.xlu1 %585, %v245_v2  }
  0x4f   : > { %588 = vset.pattern.permute.xlu0 %v743_v9 }
  0x50   : > { %587 = vset.pattern.permute.xlu1 %v743_v9 }
  0x51   : > { %324 = vperm.xlu1 %587, %v245_v2  }
  0xbc   : > { %v265_v17 = vpop.permute.xlu1 %264  ;;  %v255_v18 = vpop.permute.xlu0 %254 }
  0xbd   : > { %v261_v20 = vmul.f32 %v260_v15, %v255_v18  ;;  %v271_v25 = vmul.f32 %v270_v19, %v265_v17 }
  0xc0   : > { %v250_v23 = vpop.permute.xlu0 %249 }
  0xc1   : > { %v262_v26 = vadd.f32 %v261_v20, %v250_v23  ;;  %v275_v27 = vpop.permute.xlu1 %274 }
  0xc2   : > { %v281_v28 = vmul.f32 %v280_v21, %v275_v27 }
  0xc3   : > { %v272_v30 = vadd.f32 %v271_v25, %v262_v26 }
  0xc5   : > { %v282_v34 = vadd.f32 %v281_v28, %v272_v30  ;;  %v285_v35 = vpop.permute.xlu0 %284 }
  0xc6   : > { %v291_v36 = vmul.f32 %v290_v29, %v285_v35  ;;  %v295_v37 = vpop.permute.xlu1 %294 }
  0xc7   : > { %v301_v39 = vmul.f32 %v300_v31, %v295_v37 }
  0xc8   : > { %v292_v38 = vadd.f32 %v291_v36, %v282_v34 }
  0xca   : > { %v315_v43 = vpop.permute.xlu0 %314  ;;  %v302_v45 = vadd.f32 %v301_v39, %v292_v38 }
  0xcb   : > { %v305_v44 = vpop.permute.xlu1 %304  ;;  %v321_v47 = vmul.f32 %v320_v41, %v315_v43 }
  0xcc   : > { %v311_v46 = vmul.f32 %v310_v40, %v305_v44 }
  0xce   : > { %v312_v49 = vadd.f32 %v311_v46, %v302_v45 }
  0xd0   : > { %v322_v50 = vadd.f32 %v321_v47, %v312_v49  ;;  %v325_v51 = vpop.permute.xlu1 %324 }
  0xd1   : > { %v331_v52 = vmul.f32 %v330_v48, %v325_v51 }
  0xd3   : > { %v332_v54 = vadd.f32 %v331_v52, %v322_v50 }
  0xd5   : > { %v335_v55 = vadd.f32 %v334_v53, %v332_v54  ;;  %333 = vst [vmem:[%s243_s25] sm:$0xff] %v332_v54 }
  0xd6   : > { %632 = shalt.err (!%p629_p6)
}
  0xd7   : > { %s633_s27 = scalar_lea.hbm %s909_s9, 128  ;;  %s637_s18 = scalar_lea.hbm %s993_s4, 256 }
  0xd8   : > { %p634_p4 = scmp.ne.s32.totalorder %s909_s9, %s633_s27  ;;  %p638_p1 = scmp.lt.u32.totalorder %s909_s9, %s993_s4 }
  0xd9   : > { %p639_p2 = scmp.lt.u32.totalorder %s637_s18, %s633_s27  ;;  %p641_p8 = scmp.lt.u32.totalorder %s633_s27, %s909_s9 }
  0xda   : > { %p635_p10 = pnand %p634_p4, %p1002_p9 }
  0xdb   : > { %p640_p5 = por %p639_p2, %p638_p1 }
  0xdc   : > { %p636_p12 = pneg %p635_p10 }
  0xdd   : > { %p642_p11 = por %p641_p8, %p640_p5 }
  0xdf   : > { %p643_p0 = pnand %p642_p11, %p636_p12 }
  0xe1   : > { %646 = shalt.err (!%p643_p0)
}
  0xe2   : > { %508 = dma.vmem_to_hbm [thread:$0]  (%p1002_p9), %s911_s26, 128, %s909_s9, %s343_s10   ;;  %336 = vst [vmem:[%s236_s6] sm:$0xff] %v335_v55 }
  0xe3   : > { %s338_s12 = scalar_lea.sflag [#allocation4], %s882_s11  ;;  %s647_s24 = scalar_lea.vmem %s918_s5, 128 }
  0xe4   : > { %p648_p7 = scmp.ne.s32.totalorder %s918_s5, %s647_s24  ;;  %s745_s7 = smov [#allocation5]  }
  0xe5   : > { %s651_s27 = sshll.u32 %s745_s7, 4  ;;  %s652_s27 = int_to_ptr.vmem [resolvable:$false] %s651_s27 }
  0xe6   : > { %p649_p13 = pnand %p648_p7, %p1002_p9  ;;  %s653_s25 = scalar_lea.vmem %s652_s27, 256 }
  0xe7   : > { %p654_p6 = scmp.lt.s32.totalorder %s918_s5, %s652_s27  ;;  %p655_p4 = scmp.lt.s32.totalorder %s653_s25, %s647_s24 }
  0xe8   : > { %p650_p3 = pneg %p649_p13 }
  0xe9   : > { %p656_p10 = por %p655_p4, %p654_p6 }
  0xeb   : > { %p657_p12 = pnand %p656_p10, %p650_p3 }
  0xed   : > { %660 = shalt.err (!%p657_p12)
}
  0xee   : > { %s661_s11 = scalar_lea.hbm %s916_s13, 128  ;;  %s665_s6 = scalar_lea.hbm %s992_s3, 256 }
  0xef   : > { %p662_p1 = scmp.ne.s32.totalorder %s916_s13, %s661_s11  ;;  %p666_p8 = scmp.lt.u32.totalorder %s916_s13, %s992_s3 }
  0xf0   : > { %p667_p11 = scmp.lt.u32.totalorder %s665_s6, %s661_s11  ;;  %p669_p7 = scmp.lt.u32.totalorder %s661_s11, %s916_s13 }
  0xf1   : > { %p663_p2 = pnand %p662_p1, %p1002_p9 }
  0xf2   : > { %p668_p0 = por %p667_p11, %p666_p8 }
  0xf3   : > { %p664_p5 = pneg %p663_p2 }
  0xf4   : > { %p670_p13 = por %p669_p7, %p668_p0 }
  0xf6   : > { %p671_p3 = pnand %p670_p13, %p664_p5 }
  0xf8   : > { %674 = shalt.err (!%p671_p3)
}
  0xf9   : > { %507 = dma.vmem_to_hbm [thread:$0]  (%p1002_p9), %s918_s5, 128, %s916_s13, %s338_s12  }
  0xfa PF: > { %s385_s8 = sand.u32 1, %s713_s15   ;;  %p1003_p6 = scmp.ne.s32.totalorder %s998_s30, 0 }
  0xfb   : > { %p1004_p4 = scmp.ge.s32.totalorder %s733_s20, 2  ;;  %s386_s18 = scalar_lea.sflag [#allocation4], %s385_s8 }
  0xfd   : > { %p516_p10 = pnand %p1004_p4, %p1003_p6 }
  0xff   : > { %704 = dma.done.wait (!%p516_p10), %s386_s18, 128  }
 0x100   : > { %706 = vsyncadd (!%p516_p10), %s386_s18, 4294967168  ;;  %s395_s22 = scalar_lea.sflag [#allocation7], %s385_s8 }
 0x101   : > { %708 = dma.done.wait (!%p516_p10), %s395_s22, 128  }
 0x102   : > { %710 = vsyncadd (!%p516_p10), %s395_s22, 4294967168  ;;  %s24_s20 = sadd.s32 1, %s733_s20   ;;  %s1005_s15 = smov %s717_s16 }
 0x103   : > { %p21_p12 = scmp.ge.s32.totalorder %s24_s20, 4   ;;  %s1006_s16 = smov %s721_s17 }
 0x104   : > { %s1007_s17 = smov %s827_s29  ;;  %s1008_s18 = smov %s729_s19 }
 0x105   : > { %s1009_s19 = smov %s1011_s23  ;;  %23 = sbr.rel (!%p21_p12) target bundleno = 8 (0x8), region = 94 }
 0x10c   :  { %400 = vsyncpa [#allocation3], 1 }
 0x10d   :  { %402 = vsyncpa [#allocation3 + $0x1], 1 }
 0x10e   :  { %403 = vsyncpa [#allocation4], 1 }
 0x10f   :  { %405 = vsyncpa [#allocation4 + $0x1], 1 }
 0x110   :  { %406 = vsyncpa [#allocation7], 1 }
 0x111   :  { %408 = vsyncpa [#allocation7 + $0x1], 1 }

</bundles_post_ra>
